<compile_context>
chip_gen: v7x
topology: tpu7x:2x2x1
jax: 0.10.0
libtpu: 0.0.40
codegen_flags: <defaults>
</compile_context>

<pallas_src>
import jax
import jax.numpy as jnp
from jax.experimental import pallas as pl
from jax.experimental.pallas import tpu as pltpu


# ----------------------------------------------------------------------------
# Kernel
# ----------------------------------------------------------------------------
def _encoder_kernel(emb_ref, out_ref):
    # emb_ref: (Bt, D)            embedding rows for this batch tile
    # out_ref: (Bt, max_len * D)  lane-dense output slab
    d = emb_ref.shape[1]
    reps = out_ref.shape[1] // d
    # Row-major tiling: out[b, t*D + j] == emb[b, j]  <=>  repeat along time.
    # Single full-width store; kernel is HBM-write bound so the lane
    # replication is hidden filler.
    out_ref[...] = jnp.tile(emb_ref[...], (1, reps)).astype(out_ref.dtype)


# ----------------------------------------------------------------------------
# Sizing helpers
# ----------------------------------------------------------------------------
_FAST_PATH_BYTES = 1 << 20  # below this, skip Pallas entirely


def _vmem_capacity_bytes():
    try:
        return int(pltpu.get_tpu_info().vmem_capacity_bytes)
    except Exception:
        return 64 * 1024 * 1024  # conservative: v7x per-TensorCore physical


def _sublane_tile(itemsize):
    # f32 -> 8, bf16/f16 -> 16, int8/fp8 -> 32 (packed sublanes).
    return max(8, 32 // max(1, itemsize))


def _pick_block_b(b, budget_rows, sublane):
    """Largest sublane-aligned batch-block that fits the VMEM budget,
    preferring a divisor of b and >= 2 grid steps (v7x megacore)."""
    target = min(b, budget_rows)
    # Encourage >= 2 grid steps so both v7x TensorCores get work.
    if b >= 2 * sublane:
        target = min(target, pl.cdiv(b, 2))
    block_b = (target // sublane) * sublane
    if block_b == 0:
        # Tiny batch: the full dim is always a legal block.
        return min(b, sublane) if b <= sublane else sublane
    if block_b < b and b % block_b != 0:
        # Prefer a divisor of b (no ragged tail). Ragged is still correct
        # (Pallas masks the partial block) if no divisor is found.
        cand = block_b
        while cand >= sublane:
            if b % cand == 0:
                block_b = cand
                break
            cand -= sublane
    return block_b


# ----------------------------------------------------------------------------
# Forward wrapper
# ----------------------------------------------------------------------------
def simple_encoder_forward(mel_input, embedding, max_len, *,
                           out_dtype=None, force_pallas=False):
    """Replicates SimpleEncoder.forward.

    mel_input is accepted for signature parity with the PyTorch module but is
    not used (exactly as in the reference). max_len must be a static int.
    out_dtype optionally downcasts the output (e.g. bf16) to halve HBM writes.
    """
    del mel_input  # unused, matches PyTorch forward
    b, d = embedding.shape
    flat = max_len * d  # lane-dense last dim of the kernel output
    out_dtype = embedding.dtype if out_dtype is None else jnp.dtype(out_dtype)

    in_itemsize = jnp.dtype(embedding.dtype).itemsize
    out_itemsize = jnp.dtype(out_dtype).itemsize
    out_bytes = b * flat * out_itemsize

    # ---- Fast path: tiny workloads are pure dispatch overhead in Pallas. ----
    if not force_pallas and out_bytes < _FAST_PATH_BYTES:
        return jnp.broadcast_to(
            embedding.astype(out_dtype)[:, None, :], (b, max_len, d))

    # ---- VMEM budget (double-buffered input AND output blocks). -------------
    vmem_cap = _vmem_capacity_bytes()
    # 32 MiB on v7x (64 MiB physical), 64 MiB on v5e/v6e (128 MiB physical).
    vmem_limit = int(min(vmem_cap // 2, 64 * 1024 * 1024))
    # One buffer-set (input block + output block); x2 for double buffering,
    # plus ~4 MiB headroom for compiler-internal scratch.
    max_block_bytes = max(1, (vmem_limit - 4 * 1024 * 1024) // 2)
    row_bytes = flat * out_itemsize + d * in_itemsize
    budget_rows = max_block_bytes // max(1, row_bytes)

    if budget_rows < 1:
        # A single sublane-aligned row group would not fit VMEM (absurdly
        # large max_len * D).  Fall back to XLA's broadcast.
        return jnp.broadcast_to(
            embedding.astype(out_dtype)[:, None, :], (b, max_len, d))

    sublane = max(_sublane_tile(in_itemsize), _sublane_tile(out_itemsize))
    block_b = _pick_block_b(b, int(budget_rows), sublane)
    grid_b = pl.cdiv(b, block_b)

    out_flat = pl.pallas_call(
        _encoder_kernel,
        out_shape=jax.ShapeDtypeStruct((b, flat), out_dtype),
        grid=(grid_b,),
        in_specs=[pl.BlockSpec((block_b, d), lambda i: (i, 0))],
        out_specs=pl.BlockSpec((block_b, flat), lambda i: (i, 0)),
        compiler_params=pltpu.CompilerParams(
            dimension_semantics=("parallel",),
            vmem_limit_bytes=vmem_limit,
        ),
        cost_estimate=pl.CostEstimate(
            flops=0,
            transcendentals=0,
            bytes_accessed=b * d * in_itemsize + b * flat * out_itemsize,
        ),
    )(embedding)

    # Row-major contiguous -> free reshape back to (B, max_len, D).
    return out_flat.reshape(b, max_len, d)


# ----------------------------------------------------------------------------
# Self-test
# ----------------------------------------------------------------------------
if __name__ == "__main__":
    key = jax.random.PRNGKey(0)
    k_mel, k_emb, k_emb2 = jax.random.split(key, 3)

    # Small, module-consistent shapes.
    batch = 2
    hidden = 32        # embedding dim D
    max_len = 8        # hparams.max_len
    n_mels = 16        # mel frames (unused by forward, present for parity)

    mel_input = jax.random.normal(k_mel, (batch, max_len, n_mels), dtype=jnp.float32)
    embedding = jax.random.normal(k_emb, (batch, hidden), dtype=jnp.float32)
    ref = jnp.broadcast_to(embedding[:, None, :], (batch, max_len, hidden))

    # 1) Pallas path (forced: at these tiny shapes the default takes the
    #    XLA fast path, but we still must exercise the kernel itself).
    out = simple_encoder_forward(mel_input, embedding, max_len, force_pallas=True)
    out = jax.block_until_ready(out)
    assert out.shape == (batch, max_len, hidden)
    assert out.dtype == embedding.dtype
    assert bool(jnp.allclose(out, ref))

    # 2) Default path: tiny workload -> fast path (no kernel launch).
    out_fast = jax.block_until_ready(
        simple_encoder_forward(mel_input, embedding, max_len))
    assert bool(jnp.allclose(out_fast, ref))

    # 3) Larger case exercising multi-block tiling (and both v7x TCs).
    b2, d2, t2 = 32, 128, 64
    emb2 = jax.random.normal(k_emb2, (b2, d2), dtype=jnp.float32)
    out2 = jax.block_until_ready(
        simple_encoder_forward(None, emb2, t2, force_pallas=True))
    ref2 = jnp.broadcast_to(emb2[:, None, :], (b2, t2, d2))
    assert out2.shape == (b2, t2, d2)
    assert bool(jnp.allclose(out2, ref2))

    print("KERNEL_OK")
</pallas_src>

<mosaic_0001>
module attributes {stable_mosaic.version = 11 : i64} {
  func.func @_encoder_kernel(%arg0: i32, %arg1: memref<2x32xf32, #tpu.memory_space<vmem>>, %arg2: memref<2x256xf32, #tpu.memory_space<vmem>>) attributes {dimension_semantics = [#tpu.dimension_semantics<parallel>], iteration_bounds = array<i64: 1>, scalar_prefetch = 0 : i64, scratch_operands = 0 : i64, tpu.core_type = #tpu.core_type<tc>, window_params = [{transform_indices = @transform_0, window_bounds = array<i64: 2, 32>}, {transform_indices = @transform_1, window_bounds = array<i64: 2, 256>}]} {
    %c0 = arith.constant 0 : index
    %c0_0 = arith.constant 0 : index
    %0 = vector.load %arg1[%c0, %c0_0] : memref<2x32xf32, #tpu.memory_space<vmem>>, vector<2x32xf32>
    %1 = tpu.concatenate %0, %0, %0, %0, %0, %0, %0, %0 in 1 : vector<2x32xf32>, vector<2x32xf32>, vector<2x32xf32>, vector<2x32xf32>, vector<2x32xf32>, vector<2x32xf32>, vector<2x32xf32>, vector<2x32xf32> -> vector<2x256xf32>
    %c0_1 = arith.constant 0 : index
    %c0_2 = arith.constant 0 : index
    %2 = vector.load %arg2[%c0_1, %c0_2] : memref<2x256xf32, #tpu.memory_space<vmem>>, vector<2x256xf32>
    tpu.vector_store %arg2[%c0_1, %c0_2], %1 {strides = array<i32>} : memref<2x256xf32, #tpu.memory_space<vmem>>, vector<2x256xf32>,
    return
  }
  func.func @transform_0(%arg0: i32) -> (i32, i32) {
    %c0_i32 = arith.constant 0 : i32
    %c0_i32_0 = arith.constant 0 : i32
    return %arg0, %c0_i32 : i32, i32
  }
  func.func @transform_1(%arg0: i32) -> (i32, i32) {
    %c0_i32 = arith.constant 0 : i32
    %c0_i32_0 = arith.constant 0 : i32
    return %arg0, %c0_i32 : i32, i32
  }
}

</mosaic_0001>

<bundles_post_ra>
// kernel: tpu_custom_call.1
= control target key start
LH: loop header
LB: loop body
LE: loop exit
PB: predicated region body
PF: predicated region fallthrough
CT: control target
= control target key end

     0   :  { %6 = vsyncpa [#allocation3], 0  ;;  %s157_s0 = inlined_call_operand.hbm [shape: f32[2,32], index: 0, kind: input, shape index: {}]   ;;  %s158_s1 = inlined_call_operand.hbm [shape: f32[2,256], index: 1, kind: output, shape index: {}]  }
   0x1   :  { %7 = vsyncpa [#allocation4], 0  ;;  %s118_s6 = smov [#allocation2]   ;;  %s70_s10 = scalar_lea.hbm %s157_s0, 32 }
   0x2   :  { %s14_s7 = sshll.u32 %s118_s6, 4  ;;  %p71_p0 = scmp.ne.s32.totalorder %s157_s0, %s70_s10  ;;  %s15_s7 = int_to_ptr.vmem [resolvable:$true] %s14_s7 }
   0x3   :  { %p74_p1 = scmp.lt.u32.totalorder %s70_s10, %s157_s0 }
   0x5   :  { %p76_p2 = pnand %p74_p1, %p71_p0 }
   0x7   :  { %79 = shalt.err (!%p76_p2)
}
   0x8   :  { %s80_s15 = scalar_lea.vmem %s15_s7, 32  ;;  %p85_p4 = scmp.lt.s32.totalorder %s15_s7, %s15_s7 }
   0x9   :  { %p81_p3 = scmp.ne.s32.totalorder %s15_s7, %s80_s15  ;;  %p86_p5 = scmp.lt.s32.totalorder %s80_s15, %s80_s15 }
   0xb   :  { %p87_p6 = por %p86_p5, %p85_p4 }
   0xd   :  { %p88_p7 = pnand %p87_p6, %p81_p3 }
   0xf   :  { %91 = shalt.err (!%p88_p7)
}
  0x10   :  { %17 = dma.hbm_to_vmem [thread:$0]  %s157_s0, 32, %s15_s7, [#allocation3]  }
  0x11   :  { %114 = dma.done.wait [#allocation3], 32  }
  0x12   :  { %115 = vsyncadd [#allocation3], 4294967264  ;;  %v21_v0 = vld [vmem:[#allocation2] sm:$0x3]  ;;  %s119_s18 = smov 32   ;;  %s120_s19 = smov 96  }
  0x13   :  { %23 = vrot.lane.b32.xlu0 %v21_v0, %s119_s18  ;;  %29 = vrot.lane.b32.xlu1 %v21_v0, %s120_s19  ;;  %s121_s20 = smov 64   ;;  %vm32_vm0 = vcmask 261120   ;;  %vm34_vm1 = vcmask 523264   ;;  %vm36_vm2 = vcmask 785408   ;;  %s122_s21 = smov [#allocation5]  }
  0x14   :  { %s55_s22 = sshll.u32 %s122_s21, 4  ;;  %s56_s22 = int_to_ptr.vmem [resolvable:$true] %s55_s22 }
  0x15   :  { %s92_s0 = scalar_lea.vmem %s56_s22, 64  ;;  %p97_p9 = scmp.lt.s32.totalorder %s56_s22, %s56_s22 }
  0x16   :  { %p93_p8 = scmp.ne.s32.totalorder %s56_s22, %s92_s0  ;;  %p98_p10 = scmp.lt.s32.totalorder %s92_s0, %s92_s0 }
  0x17   :  { %26 = vrot.lane.b32.xlu0 %v21_v0, %s121_s20 }
  0x18   :  { %p99_p11 = por %p98_p10, %p97_p9 }
  0x1a   :  { %p100_p12 = pnand %p99_p11, %p93_p8 }
  0x85   :  { %v24_v1 = vpop.permute.xlu0 %23  ;;  %v30_v2 = vpop.permute.xlu1 %29 }
  0x86   :  { %v33_v3 = vsel %vm32_vm0, %v21_v0, %v24_v1 }
  0x89   :  { %v27_v4 = vpop.permute.xlu0 %26 }
  0x8a   :  { %v35_v5 = vsel %vm34_vm1, %v33_v3, %v27_v4 }
  0x8b   :  { %v37_v6 = vsel %vm36_vm2, %v35_v5, %v30_v2 }
  0x8c   :  { %v39_v7 = vcombine.low %v37_v6, %v37_v6 }
  0x8e   :  { %64 = vst.sshfl [vmem:[#allocation5] sm:$0x33 pattern:$0x76325410] %v39_v7 }
  0x8f   :  { %103 = shalt.err (!%p100_p12)
}
  0x90   :  { %s104_s25 = scalar_lea.hbm %s158_s1, 64 }
  0x91   :  { %p105_p13 = scmp.ne.s32.totalorder %s158_s1, %s104_s25  ;;  %p108_p0 = scmp.lt.u32.totalorder %s104_s25, %s158_s1 }
  0x93   :  { %p110_p1 = pnand %p108_p0, %p105_p13 }
  0x95   :  { %113 = shalt.err (!%p110_p1)
}
  0x96   :  { %58 = dma.vmem_to_hbm [thread:$0]  %s56_s22, 64, %s158_s1, [#allocation4]  }
  0x97   :  { %116 = dma.done.wait [#allocation4], 64  }
  0x98   :  { %117 = vsyncadd [#allocation4], 4294967232 }
  0x99   :  { %62 = vsyncpa [#allocation3], 1 }
  0x9a   :  { %63 = vsyncpa [#allocation4], 1 }

</bundles_post_ra>
